<compile_context>
chip_gen: v7x
topology: tpu7x:2x2x1
jax: 0.10.0
libtpu: 0.0.40
codegen_flags: <defaults>
</compile_context>

<pallas_src>
import functools

import jax
import jax.numpy as jnp
from jax import lax
from jax.experimental import pallas as pl
from jax.experimental.pallas import tpu as pltpu


def _round_up(x, m):
    return ((x + m - 1) // m) * m


def _choose_tile_n(n_nodes, d, k, in_itemsize, *, max_tile_n=2048, target_tiles=8):
    """Pick tile_n (multiple of 128): VMEM-safe, with enough grid depth."""
    n_pad128 = _round_up(max(n_nodes, 1), 128)
    try:
        vmem_bytes = pltpu.get_tpu_info().vmem_capacity_bytes
    except Exception:  # no TPU info available at trace time
        vmem_bytes = 64 * 1024 * 1024  # v7x floor
    budget = vmem_bytes // 4  # leave headroom for double-buffering / pipelining
    # Per node-lane footprint: double-buffered input column + f32 working copy
    # + ~6 live (K, tile_n) f32 intermediates (cross/partial/e/partial*e/...).
    per_lane = 2 * d * in_itemsize + 4 * d + 6 * 4 * max(k, 8)
    vmem_cap = max(128, (budget // per_lane) // 128 * 128)
    tile = min(max_tile_n, vmem_cap, n_pad128)
    # Enough grid steps to use both v7x TensorCores and hide DMA latency.
    if n_pad128 // tile < target_tiles and n_pad128 >= target_tiles * 128:
        depth_tile = max(128, (n_pad128 // target_tiles) // 128 * 128)
        tile = min(tile, depth_tile)
    return tile


def _graph_kmeans_kernel(emb_ref, cent_ref, csq_ref, out_ref, *, alpha, n_valid, tile_n):
    """One tile of `tile_n` nodes against all K centroids.

    emb_ref  : VMEM (D, tile_n)   node-lane-major embedding tile (f32 or bf16)
    cent_ref : VMEM (K, D)        all centroids, pre-cast to matmul dtype
    csq_ref  : VMEM (K, 1) f32    ||c||^2, hoisted to the wrapper
    out_ref  : VMEM (1, 1, 128)   this tile's scalar, broadcast across lanes
    """
    x = emb_ref[...]                                     # (D, tile_n)
    c = cent_ref[...]                                    # (K, D)
    c_sq = csq_ref[...]                                  # (K, 1) f32
    D = x.shape[0]

    # Contract over D for both dots; operands are already in the right layout
    # (no transpose / relayout materialized).
    dims = (((1,), (0,)), ((), ()))

    # Cross term c . x on the MXU -> (K, tile_n), node index lane-major.
    cross = lax.dot_general(c, x, dims, preferred_element_type=jnp.float32)

    # ||x||^2 as a lane-major row via a ones-row matvec on the (idle) MXU.
    x_f32 = x.astype(jnp.float32)
    x_sq = lax.dot_general(jnp.ones((1, D), jnp.float32), x_f32 * x_f32, dims,
                           preferred_element_type=jnp.float32)   # (1, tile_n)

    # dist = ||x||^2 + ||c||^2 - 2 c.x = partial + ||x||^2, and ||x||^2 cancels
    # inside the softmax, so run min/exp/sums on `partial` only.
    partial = c_sq - 2.0 * cross                          # (K, tile_n)
    min_p = jnp.min(partial, axis=0, keepdims=True)       # (1, tile_n)
    e = jnp.exp(-alpha * (partial - min_p))               # (K, tile_n)  EUP
    denom = jnp.sum(e, axis=0, keepdims=True)             # (1, tile_n)
    numer = jnp.sum(partial * e, axis=0, keepdims=True)   # (1, tile_n)

    # sum_k dist*softmax == (sum_k partial*e) / (sum_k e) + ||x||^2.
    # Exact EUP reciprocal (approx would inject ~1e-3 rel error for free savings
    # we don't need here).
    per_node = numer * pl.reciprocal(denom, approx=False) + x_sq   # (1, tile_n)

    # Mask padded columns of the (possibly ragged) last tile.
    col = pl.program_id(0) * tile_n + lax.broadcasted_iota(jnp.int32, (1, tile_n), 1)
    per_node = jnp.where(col < n_valid, per_node, 0.0)

    # Reduce the whole tile to one scalar in-kernel (XLU cross-lane reduce is
    # free here); store it as a lane-dense (1, 1, 128) block.
    out_ref[...] = jnp.full((1, 1, 128), jnp.sum(per_node), dtype=jnp.float32)


def graph_kmeans_loss(embeddings, centroids, alpha, *, lambd, tile_n=None,
                      input_dtype=jnp.float32):
    """embeddings: (N, D) f32, centroids: (K, D) f32, alpha: python scalar -> scalar f32.

    input_dtype=jnp.bfloat16 makes the kernel's HBM-resident embedding copy (and
    the MXU operands) bf16 -> ~2x less input traffic on this bandwidth-bound
    kernel; f32 math is kept for norms / exp / reciprocal / accumulation.
    """
    N, D = embeddings.shape
    K, Dc = centroids.shape
    assert D == Dc, "embedding dim mismatch"

    in_itemsize = jnp.dtype(input_dtype).itemsize
    if tile_n is None:
        tile_n = _choose_tile_n(N, D, K, in_itemsize)
    tile_n = int(tile_n)
    assert tile_n % 128 == 0, "tile_n must be a multiple of 128"

    num_tiles = pl.cdiv(N, tile_n)
    n_pad = num_tiles * tile_n

    # Node-lane-major layout for the kernel: (D, N).  Done once in XLA here;
    # production callers should keep embeddings resident as (D, N) upstream.
    emb_t = embeddings.astype(input_dtype).T              # (D, N)
    if n_pad != N:
        emb_t = jnp.pad(emb_t, ((0, 0), (0, n_pad - N)))  # masked in-kernel

    cent = centroids.astype(input_dtype)                  # MXU operand (pre-cast)
    c_sq = jnp.sum(centroids.astype(jnp.float32) ** 2, axis=-1, keepdims=True)  # (K,1)

    kernel = functools.partial(_graph_kmeans_kernel, alpha=float(alpha),
                               n_valid=N, tile_n=tile_n)

    partials = pl.pallas_call(
        kernel,
        out_shape=jax.ShapeDtypeStruct((num_tiles, 1, 128), jnp.float32),
        grid_spec=pltpu.PrefetchScalarGridSpec(
            num_scalar_prefetch=0,
            grid=(num_tiles,),
            in_specs=[
                pl.BlockSpec((D, tile_n), lambda i: (0, i)),   # node tile (lane-major)
                pl.BlockSpec((K, D), lambda i: (0, 0)),        # all centroids
                pl.BlockSpec((K, 1), lambda i: (0, 0)),        # ||c||^2 (hoisted)
            ],
            out_specs=pl.BlockSpec((1, 1, 128), lambda i: (i, 0, 0)),
        ),
        compiler_params=pltpu.CompilerParams(
            dimension_semantics=("parallel",),   # tiles independent -> both TCs on v7x
            vmem_limit_bytes=32 * 1024 * 1024,
        ),
    )(emb_t, cent, c_sq)

    # Tiny final reduction (num_tiles scalars) + scaling in plain JAX.
    return (lambd / N) * jnp.sum(partials[:, 0, 0])


def graph_kmeans_loss_ref(embeddings, centroids, alpha, *, lambd):
    """Pure-JAX reference matching the PyTorch forward."""
    diff = centroids[:, None, :] - embeddings[None, :, :]
    dist = jnp.sum(diff * diff, axis=-1)                      # (K, N)
    min_d = jnp.min(dist, axis=0)
    e = jnp.exp(-alpha * (dist - min_d[None, :]))
    softmax = e / jnp.sum(e, axis=0, keepdims=True)
    weighted = dist * softmax
    return lambd * jnp.mean(jnp.sum(weighted, axis=0))


if __name__ == "__main__":
    key = jax.random.PRNGKey(0)
    k_emb, k_cent = jax.random.split(key)

    # num_nodes (= number of embedded graphs), d_embed, n_clusters
    N, D, K = 2048, 32, 4
    lambd = 0.5
    alpha = 2.0

    embeddings = jax.random.normal(k_emb, (N, D), dtype=jnp.float32)
    # deterministic "initial_clusters" parameter (centroids)
    centroids = jax.random.normal(k_cent, (K, D), dtype=jnp.float32)

    loss_ref = graph_kmeans_loss_ref(embeddings, centroids, alpha, lambd=lambd)

    # f32 HBM-resident embeddings (default path).
    loss = jax.block_until_ready(
        graph_kmeans_loss(embeddings, centroids, alpha, lambd=lambd))
    assert jnp.allclose(loss, loss_ref, rtol=2e-3, atol=1e-4), (loss, loss_ref)

    # bf16 HBM-resident embeddings + bf16 MXU operands (bandwidth fast path).
    # Precision is documented above; tolerance covers the bf16 quantization of
    # embeddings/centroids amplified through exp(-alpha * ...).
    loss_bf16 = jax.block_until_ready(
        graph_kmeans_loss(embeddings, centroids, alpha, lambd=lambd,
                          input_dtype=jnp.bfloat16))
    assert jnp.allclose(loss_bf16, loss_ref, rtol=1e-1, atol=1e-1), (loss_bf16, loss_ref)

    # Ragged N exercises the masked last tile (no divisibility requirement).
    N2 = 300
    emb2 = jax.random.normal(jax.random.PRNGKey(1), (N2, D), dtype=jnp.float32)
    loss2_ref = graph_kmeans_loss_ref(emb2, centroids, alpha, lambd=lambd)
    loss2 = jax.block_until_ready(
        graph_kmeans_loss(emb2, centroids, alpha, lambd=lambd))
    assert jnp.allclose(loss2, loss2_ref, rtol=2e-3, atol=1e-4), (loss2, loss2_ref)

    print("KERNEL_OK")
</pallas_src>

<mosaic_0001>
module attributes {stable_mosaic.version = 11 : i64} {
  func.func @_graph_kmeans_kernel(%arg0: i32, %arg1: memref<32x256xf32, #tpu.memory_space<vmem>>, %arg2: memref<4x32xf32, #tpu.memory_space<vmem>>, %arg3: memref<4x1xf32, #tpu.memory_space<vmem>>, %arg4: memref<1x1x128xf32, #tpu.memory_space<vmem>>) attributes {dimension_semantics = [#tpu.dimension_semantics<parallel>], iteration_bounds = array<i64: 8>, scalar_prefetch = 0 : i64, scratch_operands = 0 : i64, tpu.core_type = #tpu.core_type<tc>, window_params = [{transform_indices = @transform_0, window_bounds = array<i64: 32, 256>}, {pipeline_mode = #tpu.pipeline_mode<synchronous>, transform_indices = @transform_1, window_bounds = array<i64: 4, 32>}, {pipeline_mode = #tpu.pipeline_mode<synchronous>, transform_indices = @transform_2, window_bounds = array<i64: 4, 1>}, {transform_indices = @transform_3, window_bounds = array<i64: 1, 1, 128>}]} {
    %c0 = arith.constant 0 : index
    %c0_0 = arith.constant 0 : index
    %0 = vector.load %arg1[%c0, %c0_0] : memref<32x256xf32, #tpu.memory_space<vmem>>, vector<32x256xf32>
    %c0_1 = arith.constant 0 : index
    %c0_2 = arith.constant 0 : index
    %1 = vector.load %arg2[%c0_1, %c0_2] : memref<4x32xf32, #tpu.memory_space<vmem>>, vector<4x32xf32>
    %c0_3 = arith.constant 0 : index
    %c0_4 = arith.constant 0 : index
    %2 = vector.load %arg3[%c0_3, %c0_4] : memref<4x1xf32, #tpu.memory_space<vmem>>, vector<4x1xf32>
    %cst = arith.constant dense<0.000000e+00> : vector<4x256xf32>
    %3 = tpu.matmul %1, %0, %cst {dimension_numbers = #tpu.dot_dimension_numbers<[1], [0], [0], [1], [0, 0, 1, 1], [], []>} : vector<4x32xf32>, vector<32x256xf32>, vector<4x256xf32> -> vector<4x256xf32>
    %cst_5 = arith.constant 1.000000e+00 : f32
    %4 = vector.broadcast %cst_5 : f32 to vector<1x32xf32>
    %5 = arith.mulf %0, %0 : vector<32x256xf32>
    %cst_6 = arith.constant dense<0.000000e+00> : vector<1x256xf32>
    %6 = tpu.matmul %4, %5, %cst_6 {dimension_numbers = #tpu.dot_dimension_numbers<[1], [0], [0], [1], [0, 0, 1, 1], [], []>} : vector<1x32xf32>, vector<32x256xf32>, vector<1x256xf32> -> vector<1x256xf32>
    %cst_7 = arith.constant 2.000000e+00 : f32
    %7 = vector.broadcast %cst_7 : f32 to vector<4x256xf32>
    %8 = arith.mulf %7, %3 : vector<4x256xf32>
    %9 = vector.broadcast %2 : vector<4x1xf32> to vector<4x256xf32>
    %10 = arith.subf %9, %8 : vector<4x256xf32>
    %cst_8 = arith.constant dense<0x7F800000> : vector<256xf32>
    %11 = vector.multi_reduction <minimumf>, %10, %cst_8 [0] : vector<4x256xf32> to vector<256xf32>
    %12 = vector.shape_cast %11 : vector<256xf32> to vector<1x256xf32>
    %13 = vector.broadcast %12 : vector<1x256xf32> to vector<4x256xf32>
    %14 = arith.subf %10, %13 : vector<4x256xf32>
    %cst_9 = arith.constant -2.000000e+00 : f32
    %15 = vector.broadcast %cst_9 : f32 to vector<4x256xf32>
    %16 = arith.mulf %15, %14 : vector<4x256xf32>
    %17 = math.exp %16 : vector<4x256xf32>
    %cst_10 = arith.constant dense<0.000000e+00> : vector<256xf32>
    %18 = vector.multi_reduction <add>, %17, %cst_10 [0] : vector<4x256xf32> to vector<256xf32>
    %19 = vector.shape_cast %18 : vector<256xf32> to vector<1x256xf32>
    %20 = arith.mulf %10, %17 : vector<4x256xf32>
    %cst_11 = arith.constant dense<0.000000e+00> : vector<256xf32>
    %21 = vector.multi_reduction <add>, %20, %cst_11 [0] : vector<4x256xf32> to vector<256xf32>
    %22 = vector.shape_cast %21 : vector<256xf32> to vector<1x256xf32>
    %23 = tpu.reciprocal %19 : vector<1x256xf32> -> vector<1x256xf32>
    %24 = arith.mulf %22, %23 : vector<1x256xf32>
    %25 = arith.addf %24, %6 : vector<1x256xf32>
    %c256_i32 = arith.constant 256 : i32
    %26 = arith.muli %arg0, %c256_i32 : i32
    %27 = tpu.iota {dimensions = array<i32: 1>} : vector<1x256xi32>
    %28 = vector.broadcast %26 : i32 to vector<1x256xi32>
    %29 = arith.addi %28, %27 : vector<1x256xi32>
    %c2048_i32 = arith.constant 2048 : i32
    %30 = vector.broadcast %c2048_i32 : i32 to vector<1x256xi32>
    %31 = arith.cmpi slt, %29, %30 : vector<1x256xi32>
    %cst_12 = arith.constant 0.000000e+00 : f32
    %32 = vector.broadcast %cst_12 : f32 to vector<1x256xf32>
    %33 = arith.select %31, %25, %32 : vector<1x256xi1>, vector<1x256xf32>
    %34 = vector.shape_cast %33 : vector<1x256xf32> to vector<1x1x256xf32>
    %cst_13 = arith.constant dense<0.000000e+00> : vector<1xf32>
    %35 = vector.multi_reduction <add>, %34, %cst_13 [1, 2] : vector<1x1x256xf32> to vector<1xf32>
    %36 = vector.shape_cast %35 : vector<1xf32> to vector<1x1x1xf32>
    %37 = vector.extract %36[0, 0, 0] : f32 from vector<1x1x1xf32>
    %38 = vector.broadcast %37 : f32 to vector<1x1x128xf32>
    %c0_14 = arith.constant 0 : index
    %c0_15 = arith.constant 0 : index
    %c0_16 = arith.constant 0 : index
    %39 = vector.load %arg4[%c0_14, %c0_15, %c0_16] : memref<1x1x128xf32, #tpu.memory_space<vmem>>, vector<1x1x128xf32>
    tpu.vector_store %arg4[%c0_14, %c0_15, %c0_16], %38 {strides = array<i32>} : memref<1x1x128xf32, #tpu.memory_space<vmem>>, vector<1x1x128xf32>,
    return
  }
  func.func @transform_0(%arg0: i32) -> (i32, i32) {
    %c0_i32 = arith.constant 0 : i32
    %c0_i32_0 = arith.constant 0 : i32
    return %c0_i32, %arg0 : i32, i32
  }
  func.func @transform_1(%arg0: i32) -> (i32, i32) {
    %c0_i32 = arith.constant 0 : i32
    %c0_i32_0 = arith.constant 0 : i32
    %c0_i32_1 = arith.constant 0 : i32
    return %c0_i32, %c0_i32_0 : i32, i32
  }
  func.func @transform_2(%arg0: i32) -> (i32, i32) {
    %c0_i32 = arith.constant 0 : i32
    %c0_i32_0 = arith.constant 0 : i32
    %c0_i32_1 = arith.constant 0 : i32
    return %c0_i32, %c0_i32_0 : i32, i32
  }
  func.func @transform_3(%arg0: i32) -> (i32, i32, i32) {
    %c0_i32 = arith.constant 0 : i32
    %c0_i32_0 = arith.constant 0 : i32
    %c0_i32_1 = arith.constant 0 : i32
    return %arg0, %c0_i32, %c0_i32_0 : i32, i32, i32
  }
}

</mosaic_0001>

<bundles_post_ra>
// kernel: tpu_custom_call.1
= control target key start
LH: loop header
LB: loop body
LE: loop exit
PB: predicated region body
PF: predicated region fallthrough
CT: control target
= control target key end

     0   :  { %8 = vsyncpa [#allocation3], 0  ;;  %s929_s0 = inlined_call_operand.hbm [shape: f32[32,2048], index: 0, kind: input, shape index: {}]   ;;  %s930_s1 = inlined_call_operand.vmem [shape: f32[4,32], index: 1, kind: input, shape index: {}]   ;;  %s931_s2 = inlined_call_operand.vmem [shape: f32[4,1], index: 2, kind: input, shape index: {}]   ;;  %s932_s3 = inlined_call_operand.hbm [shape: f32[8,1,128], index: 3, kind: output, shape index: {}]  }
   0x1   :  { %10 = vsyncpa [#allocation3 + $0x1], 0 }
   0x2   :  { %11 = vsyncpa [#allocation4], 0 }
   0x3   :  { %13 = vsyncpa [#allocation4 + $0x1], 0  ;;  %s749_s12 = smov 0   ;;  %s751_s13 = smov 0  }
   0x4   :  { %s753_s14 = smov 0   ;;  %s755_s15 = smov 0  }
   0x5 LB: > { %s770_s16 = sadd.s32 4294967295, %s719_s15   ;;  %s529_s17 = sadd.s32 4294967294, %s719_s15   ;;  %s719_s15 = sphi %s755_s15, %s945_s15   ;;  %s715_s14 = sphi %s753_s14, %s944_s14   ;;  %s711_s13 = sphi %s751_s13, %s943_s13   ;;  %s707_s12 = sphi %s749_s12, %s942_s12  }
   0x6   : > { %s774_s18 = sadd.s32 1, %s719_s15   ;;  %s26_s19 = sadd.s32 1, %s715_s14 }
   0x7   : > { %s23_s20 = ssub.s32 %s719_s15, %s774_s18  ;;  %p33_p0 = scmp.ne.s32.totalorder %s715_s14, %s711_s13 }
   0x8   : > { %p24_p1 = scmp.eq.s32.totalorder %s23_s20, 0  ;;  %p34_p2 = scmp.eq.s32.totalorder %s719_s15, 0 }
   0x9   : > { %p39_p3 = scmp.ne.s32.totalorder %s711_s13, %s707_s12  ;;  %p40_p4 = scmp.eq.s32.totalorder %s770_s16, 0 }
   0xa   : > { %s786_s21 = scalar_select %p24_p1, %s715_s14, %s26_s19  }
   0xb   : > { %p788_p5 = por %p34_p2, %p33_p0  ;;  %p792_p6 = por %p40_p4, %p39_p3 }
   0xc   : > { %p105_p7 = scmp.eq.s32.totalorder %s770_s16, 7  ;;  %p111_p8 = scmp.eq.s32.totalorder %s529_s17, 7 }
   0xd   : > { %p574_p9 = scmp.lt.s32.totalorder %s719_s15, 8  ;;  %s137_s26 = sand.u32 1, %s715_s14  }
   0xe   : > { %p798_p10 = por %p105_p7, %p33_p0  ;;  %p802_p11 = por %p111_p8, %p39_p3 }
   0xf   : > { %s543_s27 = sshll.u32 %s719_s15, 8  ;;  %s532_s28 = sshll.u32 %s137_s26, 6 }
  0x10   : > { %s936_s24 = scalar_select %p798_p10, 1, 0 }
  0x11   : > { %s937_s25 = scalar_select %p802_p11, 1, 0 }
  0x12   : > { %s811_s4 = scalar_lea.hbm %s929_s0, %s543_s27  ;;  %s141_s5 = scalar_lea.vmem [#allocation2], %s532_s28 }
  0x13   : > { %s148_s6 = sshll.u32 %s141_s5, 4  ;;  %p815_p12 = pnand %p574_p9, %p788_p5  ;;  %s819_s6 = int_to_ptr.vmem [resolvable:$true] %s148_s6 }
  0x14   : > { %s822_s8 = scalar_lea.sflag [#allocation3], %s137_s26  ;;  %s623_s9 = scalar_lea.hbm %s811_s4, 1024 }
  0x15   : > { %p624_p0 = scmp.ne.s32.totalorder %s811_s4, %s623_s9  ;;  %p625_p1 = pneg %p815_p12 }
  0x16   : > { %s628_s17 = scalar_lea.hbm %s929_s0, 8192  ;;  %p629_p4 = scmp.lt.u32.totalorder %s811_s4, %s929_s0 }
  0x17   : > { %p626_p2 = pnand %p625_p1, %p624_p0  ;;  %p630_p5 = scmp.lt.u32.totalorder %s628_s17, %s623_s9 }
  0x18   : > { %p632_p8 = scmp.lt.u32.totalorder %s623_s9, %s811_s4 }
  0x19   : > { %p627_p3 = pneg %p626_p2  ;;  %p631_p7 = por %p630_p5, %p629_p4 }
  0x1b   : > { %p633_p9 = por %p632_p8, %p631_p7 }
  0x1d   : > { %p634_p13 = pnand %p633_p9, %p627_p3 }
  0x1f   : > { %637 = shalt.err (!%p634_p13)
}
  0x20   : > { %s638_s22 = scalar_lea.vmem %s819_s6, 1024  ;;  %s721_s26 = smov [#allocation2]  }
  0x21   : > { %p639_p0 = scmp.ne.s32.totalorder %s819_s6, %s638_s22  ;;  %s643_s27 = sshll.u32 %s721_s26, 4  ;;  %s644_s27 = int_to_ptr.vmem [resolvable:$false] %s643_s27 }
  0x22   : > { %s645_s28 = scalar_lea.vmem %s644_s27, 2048  ;;  %p646_p10 = scmp.lt.s32.totalorder %s819_s6, %s644_s27 }
  0x23   : > { %p641_p2 = pnand %p639_p0, %p625_p1  ;;  %p647_p4 = scmp.lt.s32.totalorder %s645_s28, %s638_s22 }
  0x25   : > { %p642_p11 = pneg %p641_p2  ;;  %p648_p5 = por %p647_p4, %p646_p10 }
  0x27   : > { %p649_p7 = pnand %p648_p5, %p642_p11 }
  0x29   : > { %652 = shalt.err (!%p649_p7)
}
  0x2a   : > { %s722_s29 = smov 2048   ;;  %s723_s30 = smov 256  }
  0x2b   : > { %s724_s5 = smov 16   ;;  %p156_p13 = scmp.lt.s32.totalorder %s719_s15, 9 }
  0x2c   : > { %569 = dma.hbm_to_vmem [thread:$0]  (!%p815_p12), %s811_s4, 1024, %s819_s6, %s822_s8, %s722_s29, %s723_s30, %s724_s5  }
  0x2d   : > { %p939_p1 = scmp.ge.s32.totalorder %s719_s15, 1 }
  0x2f   : > { %p157_p3 = pnand %p939_p1, %p156_p13 }
  0x30   : > { %s854_s9 = sand.u32 (!%p157_p3), 1, %s711_s13  }
  0x31   : > { %160 = sbr.rel (%p157_p3) target bundleno = 566 (0x236), region = 32  ;;  %s536_s10 = sshll.u32 (!%p157_p3), %s854_s9, 6 }
  0x32   : > { %s163_s11 = scalar_lea.sflag (!%p157_p3), [#allocation3], %s854_s9  ;;  %s166_s17 = scalar_lea.vmem (!%p157_p3), [#allocation2], %s536_s10 }
  0x38   : > { %698 = dma.done.wait (%p792_p6), %s163_s11, 1024  }
  0x39   : > { %700 = vsyncadd (%p792_p6), %s163_s11, 4294966272  ;;  %v725_v0 = vmov 0.0   ;;  %v726_v1 = vmov 0   ;;  %v190_v2 = vld [vmem:[%s166_s17 + $0x8] sm:$0xff]  ;;  %v192_v3 = vld [vmem:[%s166_s17 + $0x18] sm:$0xff]  ;;  %vm199_vm0 = vcmask 261120  }
  0x3a   : > { %267 = vmatprep.mubr.f32.mxu0 %v725_v0  ;;  %349 = vmatprep.mubr.f32.mxu1 %v725_v0  ;;  %v189_v4 = vld [vmem:[%s166_s17] sm:$0xff]  ;;  %v544_v5 = vpack.c.bf16 %v192_v3, %v190_v2  ;;  %v191_v6 = vld [vmem:[%s166_s17 + $0x10] sm:$0xff]  ;;  %v194_v7 = vld [vmem:[%s166_s17 + $0x28] sm:$0xff]  ;;  %v275_v9 = vmul.f32 %v190_v2, %v190_v2  ;;  %v277_v10 = vmul.f32 %v192_v3, %v192_v3  ;;  %v727_v28 = vmov 1.0   ;;  %s539_s8 = sshll.u32 %s770_s16, 8  ;;  %s187_s19 = scalar_lea.vmem [#allocation5], %s854_s9 }
  0x3b   : > { %614 = vset.pattern.permute.xlu0 %v726_v1  ;;  %v196_v8 = vld [vmem:[%s166_s17 + $0x38] sm:$0xff]  ;;  %v274_v11 = vmul.f32 %v189_v4, %v189_v4  ;;  %v546_v12 = vpack.c.bf16 %v191_v6, %v189_v4  ;;  %v193_v14 = vld [vmem:[%s166_s17 + $0x20] sm:$0xff]  ;;  %v195_v15 = vld [vmem:[%s166_s17 + $0x30] sm:$0xff]  ;;  %v276_v16 = vmul.f32 %v191_v6, %v191_v6  ;;  %v279_v17 = vmul.f32 %v194_v7, %v194_v7  ;;  %s463_s20 = sshll.u32 %s187_s19, 4  ;;  %s540_s22 = sshll.u32 %s770_s16, 4  ;;  %s883_s20 = int_to_ptr.vmem [resolvable:$true] %s463_s20 }
  0x3c   : > { %v548_v13 = vpack.c.bf16 %v196_v8, %v194_v7  ;;  %545 = vmatprep.subr.bf16.mxu0 %v544_v5  ;;  %v552_v18 = vpack.c.bf16 %v277_v10, %v275_v9  ;;  %v281_v19 = vmul.f32 %v196_v8, %v196_v8  ;;  %v278_v20 = vmul.f32 %v193_v14, %v193_v14  ;;  %v198_v21 = vld [vmem:[%s931_s2] sm:$0xf]  ;;  %s888_s29 = scalar_lea.hbm %s932_s3, %s540_s22  ;;  %s451_s30 = scalar_lea.sflag [#allocation4], %s854_s9 }
  0x3d   : > { %547 = vmatpush1.bf16.msra.mxu0 %v546_v12  ;;  %v550_v22 = vpack.c.bf16 %v195_v15, %v193_v14  ;;  %v554_v23 = vpack.c.bf16 %v276_v16, %v274_v11  ;;  %v280_v24 = vmul.f32 %v195_v15, %v195_v15  ;;  %360 = vperm.xlu0 %614, %v198_v21   ;;  %v197_v27 = vld [vmem:[%s930_s1] sm:$0xf]  ;;  %vm365_vm1 = vcmask 1043456   ;;  %s653_s5 = scalar_lea.vmem %s883_s20, 16  ;;  %p940_p10 = scmp.ne.s32.totalorder %s936_s24, 0 }
  0x3e   : > { %549 = vmatprep.subr.bf16.mxu0 %v548_v13  ;;  %553 = vmatprep.subr.bf16.mxu1 %v552_v18  ;;  %v556_v25 = vpack.c.bf16 %v281_v19, %v279_v17  ;;  %v425_v16 = vlaneseq  ;;  %vm435_vm4 = vcmask 1040384   ;;  %p654_p6 = scmp.ne.s32.totalorder %s883_s20, %s653_s5  ;;  %s728_s16 = smov [#allocation5]  }
  0x3f   : > { %555 = vmatpush1.bf16.msra.mxu1 %v554_v23  ;;  %v558_v26 = vpack.c.bf16 %v280_v24, %v278_v20  ;;  %s657_s10 = sshll.u32 %s728_s16, 4  ;;  %s658_s10 = int_to_ptr.vmem [resolvable:$false] %s657_s10 }
  0x40   : > { %557 = vmatprep.subr.bf16.mxu1 %v556_v25  ;;  %v428_v25 = vstv %s539_s8  ;;  %p655_p11 = pnand %p654_p6, %p940_p10  ;;  %s659_s11 = scalar_lea.vmem %s658_s10, 32 }
  0x41   : > { %551 = vmatpush1.bf16.msra.mxu0 %v550_v22  ;;  %v426_v22 = vand.u32 127, %v425_v16  ;;  %p660_p8 = scmp.lt.s32.totalorder %s883_s20, %s658_s10  ;;  %p661_p9 = scmp.lt.s32.totalorder %s659_s11, %s653_s5 }
  0x42   : > { %p656_p12 = pneg %p655_p11 }
  0x43   : > { %559 = vmatpush1.bf16.msra.mxu1 %v558_v26  ;;  %v427_v26 = vadd.s32 128, %v426_v22  ;;  %p662_p0 = por %p661_p9, %p660_p8 }
  0x44   : > { %537 = vmatmul.mubr.msk.f32.vlgmr.msra.gmra.mrb[0].mxu0 %vm199_vm0, %v197_v27 }
  0x45   : > { %p663_p2 = pnand %p662_p0, %p656_p12 }
  0x46   : > { %538 = vmatmul.mubr.msk.f32.vlgmr.msra.gmra.mrb[0].mxu1 %vm199_vm0, %v727_v28  ;;  %v429_v28 = vadd.s32 %v428_v25, %v426_v22 }
  0x48   : > { %vm431_vm2 = vcmp.lt.s32.totalorder %v429_v28, 2048 }
  0xbc   : > { %v361_v30 = vpop.permute.xlu0 %360 }
 0x117   : > { %v269_v29 = vpop.f32.mrb[0].mxu0 }
 0x118   : > { %v356_v31 = vmul.f32 2.0, %v269_v29  ;;  %v271_v32 = vpop.f32.mrb[1].mxu0 }
 0x119   : > { %v357_v33 = vmul.f32 2.0, %v271_v32  ;;  %v868_v34 = vpop.f32.mrb[0].mxu1 }
 0x11a   : > { %v363_v35 = vsub.f32 %v361_v30, %v356_v31  ;;  %v870_v36 = vpop.f32.mrb[1].mxu1 }
 0x11b   : > { %v364_v37 = vsub.f32 %v361_v30, %v357_v33  ;;  %v430_v30 = vadd.s32 %v428_v25, %v427_v26 }
 0x11c   : > { %v366_v38 = vsel %vm365_vm1, %v363_v35, inf }
 0x11d   : > { %v367_v39 = vrot.slane %v366_v38, 4  ;;  %v373_v40 = vsel %vm365_vm1, %v364_v37, inf  ;;  %vm432_vm3 = vcmp.lt.s32.totalorder %v430_v30, 2048 }
 0x11e   : > { %v374_v41 = vrot.slane %v373_v40, 4 }
 0x11f   : > { %v368_v42 = vmin.f32 %v366_v38, %v367_v39 }
 0x120   : > { %v375_v43 = vmin.f32 %v373_v40, %v374_v41 }
 0x121   : > { %v369_v44 = vrot.slane %v368_v42, 2 }
 0x122   : > { %v376_v45 = vrot.slane %v375_v43, 2 }
 0x123   : > { %v370_v46 = vmin.f32 %v368_v42, %v369_v44 }
 0x124   : > { %v377_v47 = vmin.f32 %v375_v43, %v376_v45 }
 0x125   : > { %v371_v48 = vrot.slane %v370_v46, 1 }
 0x126   : > { %v378_v49 = vrot.slane %v377_v47, 1 }
 0x127   : > { %v372_v50 = vmin.f32 %v370_v46, %v371_v48 }
 0x128   : > { %v379_v51 = vmin.f32 %v377_v47, %v378_v49 }
 0x129   : > { %v380_v52 = vsub.f32 %v363_v35, %v372_v50 }
 0x12a   : > { %v381_v53 = vsub.f32 %v364_v37, %v379_v51 }
 0x12b   : > { %v382_v54 = vmul.f32 -2.0, %v380_v52 }
 0x12c   : > { %v383_v55 = vmul.f32 -2.0, %v381_v53 }
 0x12d   : > { %v384_v56 = vmul.f32 1.442695, %v382_v54 }
 0x12e   : > { %v386_v57 = vmul.f32 1.442695, %v383_v55 }
 0x12f   : > { %615 = vpow2.f32 %v384_v56 }
 0x130   : > { %617 = vpow2.f32 %v386_v57 }
 0x139   : > { %v616_v58 = vpop.eup %615 }
 0x13a   : > { %v618_v59 = vpop.eup %617  ;;  %v388_v60 = vsel %vm365_vm1, %v616_v58, 0.0  ;;  %v402_v61 = vmul.f32 %v616_v58, %v363_v35 }
 0x13b   : > { %v389_v62 = vrot.slane %v388_v60, 4  ;;  %v395_v63 = vsel %vm365_vm1, %v618_v59, 0.0  ;;  %v403_v0 = vmul.f32 %v618_v59, %v364_v37 }
 0x13c   : > { %v396_v1 = vrot.slane %v395_v63, 4  ;;  %v404_v2 = vsel %vm365_vm1, %v402_v61, 0.0 }
 0x13d   : > { %v405_v3 = vrot.slane %v404_v2, 4  ;;  %v411_v4 = vsel %vm365_vm1, %v403_v0, 0.0  ;;  %v390_v5 = vadd.f32 %v389_v62, %v388_v60 }
 0x13e   : > { %v412_v6 = vrot.slane %v411_v4, 4  ;;  %v397_v7 = vadd.f32 %v396_v1, %v395_v63 }
 0x13f   : > { %v391_v8 = vrot.slane %v390_v5, 2  ;;  %v406_v9 = vadd.f32 %v405_v3, %v404_v2 }
 0x140   : > { %v398_v10 = vrot.slane %v397_v7, 2  ;;  %v413_v12 = vadd.f32 %v412_v6, %v411_v4 }
 0x141   : > { %v392_v11 = vadd.f32 %v391_v8, %v390_v5  ;;  %v407_v15 = vrot.slane %v406_v9, 2 }
 0x142   : > { %v399_v13 = vadd.f32 %v398_v10, %v397_v7  ;;  %v414_v19 = vrot.slane %v413_v12, 2 }
 0x143   : > { %v393_v14 = vrot.slane %v392_v11, 1  ;;  %v408_v21 = vadd.f32 %v407_v15, %v406_v9 }
 0x144   : > { %v400_v17 = vrot.slane %v399_v13, 1  ;;  %v415_v23 = vadd.f32 %v414_v19, %v413_v12 }
 0x145   : > { %v394_v18 = vadd.f32 %v393_v14, %v392_v11  ;;  %v409_v24 = vrot.slane %v408_v21, 1 }
 0x146   : > { %v401_v20 = vadd.f32 %v400_v17, %v399_v13  ;;  %v416_v27 = vrot.slane %v415_v23, 1 }
 0x147   : > { %619 = vrcp.f32 %v394_v18  ;;  %v410_v29 = vadd.f32 %v409_v24, %v408_v21 }
 0x148   : > { %621 = vrcp.f32 %v401_v20  ;;  %v417_v32 = vadd.f32 %v416_v27, %v415_v23 }
 0x151   : > { %v620_v31 = vpop.eup %619 }
 0x152   : > { %v622_v33 = vpop.eup %621  ;;  %v420_v35 = vmul.f32 %v620_v31, %v410_v29 }
 0x153   : > { %v421_v37 = vmul.f32 %v622_v33, %v417_v32 }
 0x154   : > { %v422_v38 = vadd.f32 %v420_v35, %v868_v34 }
 0x155   : > { %v423_v39 = vadd.f32 %v421_v37, %v870_v36 }
 0x156   : > { %v433_v40 = vsel %vm431_vm2, %v422_v38, 0.0 }
 0x157   : > { %v434_v41 = vsel %vm432_vm3, %v423_v39, 0.0  ;;  %v436_v42 = vsel %vm435_vm4, %v433_v40, 0.0 }
 0x158   : > { %v437_v43 = vsel %vm435_vm4, %v434_v41, 0.0 }
 0x159   : > { %v438_v44 = vadd.f32 %v437_v43, %v436_v42 }
 0x15b   : > { %439 = vadd.xlane.f32.xlu0 %v438_v44 }
 0x1e8   : > { %v440_v45 = vpop.xlane.xlu0 %439 }
 0x1e9   : > { %v441_v46 = vrot.slane %v440_v45, 4 }
 0x1eb   : > { %v442_v47 = vadd.f32 %v441_v46, %v440_v45 }
 0x1ed   : > { %v443_v48 = vrot.slane %v442_v47, 2 }
 0x1ef   : > { %v444_v49 = vadd.f32 %v443_v48, %v442_v47 }
 0x1f1   : > { %v445_v34 = vrot.slane %v444_v49, 1 }
 0x1f3   : > { %v446_v50 = vadd.f32 %v445_v34, %v444_v49 }
 0x1f5   : > { %560 = vpush %v446_v50 }
 0x226   : > { %s561_s26 = spop %560 }
 0x227   : > { %v448_v36 = vstv %s561_s26 }
 0x228   : > { %449 = vst [vmem:[%s187_s19] sm:$0x1] %v448_v36 }
 0x229   : > { %666 = shalt.err (!%p663_p2)
}
 0x22a   : > { %s667_s9 = scalar_lea.hbm %s888_s29, 16  ;;  %s671_s4 = scalar_lea.hbm %s932_s3, 128 }
 0x22b   : > { %p668_p4 = scmp.ne.s32.totalorder %s888_s29, %s667_s9  ;;  %p672_p13 = scmp.lt.u32.totalorder %s888_s29, %s932_s3 }
 0x22c   : > { %p673_p1 = scmp.lt.u32.totalorder %s671_s4, %s667_s9  ;;  %p675_p6 = scmp.lt.u32.totalorder %s667_s9, %s888_s29 }
 0x22d   : > { %p669_p5 = pnand %p668_p4, %p940_p10 }
 0x22e   : > { %p674_p3 = por %p673_p1, %p672_p13 }
 0x22f   : > { %p670_p7 = pneg %p669_p5 }
 0x230   : > { %p676_p11 = por %p675_p6, %p674_p3 }
 0x232   : > { %p677_p12 = pnand %p676_p11, %p670_p7 }
 0x234   : > { %680 = shalt.err (!%p677_p12)
}
 0x235   : > { %564 = dma.vmem_to_hbm [thread:$0]  (%p940_p10), %s883_s20, 16, %s888_s29, %s451_s30  }
 0x236 PF: > { %p575_p8 = scmp.ge.s32.totalorder %s719_s15, 2  ;;  %s475_s8 = sand.u32 1, %s707_s12  }
 0x237   : > { %p941_p9 = scmp.ne.s32.totalorder %s937_s25, 0  ;;  %s476_s19 = scalar_lea.sflag [#allocation4], %s475_s8 }
 0x239   : > { %p571_p0 = pnand %p575_p8, %p941_p9 }
 0x23b   : > { %702 = dma.done.wait (!%p571_p0), %s476_s19, 16  }
 0x23c   : > { %704 = vsyncadd (!%p571_p0), %s476_s19, 4294967280  ;;  %p16_p2 = scmp.ge.s32.totalorder %s774_s18, 10   ;;  %s942_s12 = smov %s711_s13 }
 0x23d   : > { %s943_s13 = smov %s715_s14  ;;  %s944_s14 = smov %s786_s21 }
 0x23e   : > { %s945_s15 = smov %s774_s18  ;;  %18 = sbr.rel (!%p16_p2) target bundleno = 5 (0x5), region = 77 }
 0x245   :  { %480 = vsyncpa [#allocation3], 1 }
 0x246   :  { %482 = vsyncpa [#allocation3 + $0x1], 1 }
 0x247   :  { %483 = vsyncpa [#allocation4], 1 }
 0x248   :  { %485 = vsyncpa [#allocation4 + $0x1], 1 }

</bundles_post_ra>
